<compile_context>
chip_gen: v7x
topology: tpu7x:2x2x1
jax: 0.10.0
libtpu: 0.0.40
codegen_flags: <defaults>
</compile_context>

<pallas_src>
import functools

import jax
import jax.numpy as jnp
from jax.experimental import pallas as pl
from jax.experimental.pallas import tpu as pltpu

BLOCK_SIZE = 128   # max context length of the PyTorch module (tril buffer)
DROPOUT = 0.2      # unused at inference
N_EMBED = 264


def _head_kernel(x_ref, w_ref, o_ref, *, num_heads, head_size, mxu_dtype):
    """One grid step = `block_b` batch elements, all fused heads.

    x_ref : (block_b, T, C)                    VMEM
    w_ref : (C, 3*num_heads*head_size)         VMEM  cols = [q(all heads, pre-scaled) | k | v]
    o_ref : (block_b, T, num_heads*head_size)  VMEM
    """
    bb, T, C = x_ref.shape
    nh, H = num_heads, head_size
    nhH = nh * H
    exact = jnp.dtype(mxu_dtype) == jnp.dtype(jnp.float32)

    # Fused q/k/v projection for every head in ONE flat matmul:
    # (bb*T, C) @ (C, 3*nh*H) fills the MXU rows (M = bb*T) instead of bb
    # separate M=T matmuls, and amortizes the x load across q/k/v and heads.
    x2 = x_ref[...].astype(mxu_dtype).reshape(bb * T, C)
    qkv = jnp.dot(x2, w_ref[...], preferred_element_type=jnp.float32)
    qkv = qkv.reshape(bb, T, 3 * nhH)          # [q_heads | k_heads | v_heads]

    # Causal mask built once at (T, T) (not per batch element / head).
    row = jax.lax.broadcasted_iota(jnp.int32, (T, T), 0)
    col = jax.lax.broadcasted_iota(jnp.int32, (T, T), 1)
    causal = (row >= col)[None, :, :]          # (1, T, T)
    neg = -jnp.inf if exact else jnp.finfo(jnp.float32).min

    head_outs = []
    for h in range(nh):                        # unrolled; nh is small & static
        q = qkv[:, :, h * H:(h + 1) * H]                         # already * H**-0.5
        k = qkv[:, :, nhH + h * H:nhH + (h + 1) * H]
        v = qkv[:, :, 2 * nhH + h * H:2 * nhH + (h + 1) * H]

        # (bb, T, T): contract H directly (batched) — no explicit k transpose.
        aff = jax.lax.dot_general(
            q.astype(mxu_dtype), k.astype(mxu_dtype),
            dimension_numbers=(((2,), (2,)), ((0,), (0,))),
            preferred_element_type=jnp.float32)
        aff = jnp.where(causal, aff, neg)

        # Numerically-stable softmax in f32 (v5e VPU/EUP have no bf16).
        m = jnp.max(aff, axis=-1, keepdims=True)
        e = jnp.exp(aff - m)
        denom = jnp.sum(e, axis=-1, keepdims=True)
        if exact:
            p = e / denom                              # exact semantics oracle
        else:
            p = e * pl.reciprocal(denom, approx=True)  # EUP slot, ~free

        # TODO(synk): training-mode dropout on `p` would use pltpu.prng_seed +
        # pltpu.stateful_bernoulli; eval mode (model.eval()) == identity.

        head_outs.append(jax.lax.dot_general(
            p.astype(mxu_dtype), v.astype(mxu_dtype),
            dimension_numbers=(((2,), (1,)), ((0,), (0,))),
            preferred_element_type=jnp.float32))       # (bb, T, H)

    out = head_outs[0] if nh == 1 else jnp.concatenate(head_outs, axis=-1)
    o_ref[...] = out.astype(o_ref.dtype)       # lane-dense store when nh*H >= 128


def prepare_qkv_weight(wq, wk, wv, mxu_dtype=jnp.bfloat16):
    """Fuse q/k/v projection weights (folding the 1/sqrt(H) scale into q) into a
    single (C, 3*num_heads*head_size) matrix cast to the MXU dtype.

    wq/wk/wv: (head_size, C) for a single head (PyTorch nn.Linear layout) or
              (num_heads, head_size, C) for several fused heads.
    Do this ONCE at parameter-load time, not per forward call."""
    wq, wk, wv = jnp.asarray(wq), jnp.asarray(wk), jnp.asarray(wv)
    if wq.ndim == 2:
        wq, wk, wv = wq[None], wk[None], wv[None]
    nh, H, C = wq.shape
    scale = jnp.float32(H) ** -0.5

    def cols(w):                       # (nh, H, C) -> (C, nh*H), head-major cols
        return jnp.transpose(w.astype(jnp.float32), (2, 0, 1)).reshape(C, nh * H)

    w_qkv = jnp.concatenate([cols(wq) * scale, cols(wk), cols(wv)], axis=1)
    return w_qkv.astype(mxu_dtype)


def _pick_block_b(B, T, C, num_heads, head_size, x_itemsize, w_itemsize,
                  max_block_b=32, vmem_budget_bytes=20 << 20):
    """Largest batch tile that (a) divides B, (b) fits a rough VMEM budget,
    (c) keeps >= 2 grid steps when B >= 2 (pipelining / v7x two-TC sharding),
    preferring an even number of grid steps (balanced v7x TensorCores)."""
    nhH = num_heads * head_size
    per_elem = (
        2 * T * C * x_itemsize          # x tile, double-buffered by the pipeline
        + T * C * w_itemsize            # in-kernel cast of x to the MXU dtype
        + 4 * T * 3 * nhH               # fused qkv accumulator (f32)
        + w_itemsize * T * 3 * nhH      # q/k/v MXU-dtype copies
        + 3 * 4 * num_heads * T * T     # aff / exp / probs (f32)
        + 2 * 4 * T * nhH               # per-head outputs + concat (f32)
        + 2 * T * nhH * x_itemsize      # output tile, double-buffered
    )
    budget = vmem_budget_bytes - 2 * C * 3 * nhH * w_itemsize   # resident weight
    cap = max(1, min(max_block_b, budget // max(per_elem, 1)))
    divisors = [t for t in range(1, B + 1) if B % t == 0]
    cands = [t for t in divisors if t <= cap and (B < 2 or B // t >= 2)]
    if not cands:
        cands = [t for t in divisors if (B < 2 or B // t >= 2)] or [B]
        cands = [min(cands)]
    even = [t for t in cands if (B // t) % 2 == 0]
    return max(even) if even else max(cands)


@functools.partial(jax.jit, static_argnames=("num_heads", "head_size", "block_b"))
def head_forward(x, w_qkv, *, num_heads, head_size, block_b=None):
    """x: (B, T, C); w_qkv: (C, 3*num_heads*head_size) from prepare_qkv_weight."""
    B, T, C = x.shape
    nhH = num_heads * head_size
    if tuple(w_qkv.shape) != (C, 3 * nhH):
        raise ValueError(f"w_qkv shape {w_qkv.shape} != {(C, 3 * nhH)}")
    x_isz = jnp.dtype(x.dtype).itemsize
    w_isz = jnp.dtype(w_qkv.dtype).itemsize
    if block_b is None:
        block_b = _pick_block_b(B, T, C, num_heads, head_size, x_isz, w_isz)
    if B % block_b != 0:
        raise ValueError(f"block_b={block_b} must divide batch size B={B}")

    kernel = functools.partial(_head_kernel, num_heads=num_heads,
                               head_size=head_size, mxu_dtype=w_qkv.dtype)
    flops = 2 * B * T * C * 3 * nhH + 4 * B * num_heads * T * T * head_size
    bytes_accessed = (B * T * C * x_isz + C * 3 * nhH * w_isz + B * T * nhH * x_isz)

    return pl.pallas_call(
        kernel,
        out_shape=jax.ShapeDtypeStruct((B, T, nhH), x.dtype),
        grid_spec=pltpu.PrefetchScalarGridSpec(
            num_scalar_prefetch=0,
            grid=(B // block_b,),
            in_specs=[
                pl.BlockSpec((block_b, T, C), lambda b: (b, 0, 0)),
                pl.BlockSpec((C, 3 * nhH), lambda b: (0, 0)),
            ],
            out_specs=pl.BlockSpec((block_b, T, nhH), lambda b: (b, 0, 0)),
        ),
        compiler_params=pltpu.CompilerParams(
            dimension_semantics=("parallel",),
            vmem_limit_bytes=32 * 1024 * 1024,
        ),
        cost_estimate=pl.CostEstimate(
            flops=flops,
            transcendentals=B * num_heads * T * T,
            bytes_accessed=bytes_accessed,
        ),
    )(x, w_qkv)


def head_reference(x, wk, wq, wv):
    """Pure-JAX f32 reference mirroring the PyTorch forward (eval mode)."""
    k = x @ wk.T
    q = x @ wq.T
    v = x @ wv.T
    aff = (q @ jnp.swapaxes(k, -2, -1)) * (wk.shape[0] ** -0.5)
    T = x.shape[1]
    tril = jnp.tril(jnp.ones((T, T), dtype=bool))
    aff = jnp.where(tril, aff, -jnp.inf)
    p = jax.nn.softmax(aff, axis=-1)
    return p @ v


if __name__ == "__main__":
    key = jax.random.PRNGKey(0)
    B, T, C = 4, 8, N_EMBED
    head_size = 32

    k_x, k_wk, k_wq, k_wv = jax.random.split(key, 4)
    x = jax.random.normal(k_x, (B, T, C), dtype=jnp.float32)
    # nn.Linear(N_EMBED, head_size, bias=False) -> weight shape (head_size, N_EMBED)
    bound = 1.0 / (C ** 0.5)
    wk = jax.random.uniform(k_wk, (head_size, C), jnp.float32, -bound, bound)
    wq = jax.random.uniform(k_wq, (head_size, C), jnp.float32, -bound, bound)
    wv = jax.random.uniform(k_wv, (head_size, C), jnp.float32, -bound, bound)

    ref = head_reference(x, wk, wq, wv)

    # 1) f32 MXU semantics oracle (exact reciprocal, -inf mask).
    w_f32 = prepare_qkv_weight(wq, wk, wv, mxu_dtype=jnp.float32)
    out_f32 = jax.block_until_ready(
        head_forward(x, w_f32, num_heads=1, head_size=head_size))
    assert out_f32.shape == (B, T, head_size), out_f32.shape
    assert jnp.allclose(out_f32, ref, atol=1e-2, rtol=1e-2), "f32 mismatch vs reference"

    # 2) production single-head path: bf16 activations + bf16 MXU operands,
    #    f32 accumulation / softmax.
    w_bf16 = prepare_qkv_weight(wq, wk, wv, mxu_dtype=jnp.bfloat16)
    out_bf16 = jax.block_until_ready(
        head_forward(x.astype(jnp.bfloat16), w_bf16, num_heads=1, head_size=head_size))
    assert out_bf16.shape == (B, T, head_size), out_bf16.shape
    assert jnp.allclose(out_bf16.astype(jnp.float32), ref, atol=5e-2, rtol=5e-2), \
        "bf16 mismatch vs reference"

    # 3) multi-head fusion: 4 heads packed -> 128-lane output store, shared x load.
    num_heads = 4
    kq, kk, kv2 = jax.random.split(jax.random.PRNGKey(1), 3)
    wq_mh = jax.random.uniform(kq, (num_heads, head_size, C), jnp.float32, -bound, bound)
    wk_mh = jax.random.uniform(kk, (num_heads, head_size, C), jnp.float32, -bound, bound)
    wv_mh = jax.random.uniform(kv2, (num_heads, head_size, C), jnp.float32, -bound, bound)
    ref_mh = jnp.concatenate(
        [head_reference(x, wk_mh[h], wq_mh[h], wv_mh[h]) for h in range(num_heads)],
        axis=-1)
    w_mh = prepare_qkv_weight(wq_mh, wk_mh, wv_mh, mxu_dtype=jnp.bfloat16)
    out_mh = jax.block_until_ready(
        head_forward(x, w_mh, num_heads=num_heads, head_size=head_size))
    assert out_mh.shape == (B, T, num_heads * head_size), out_mh.shape
    assert jnp.allclose(out_mh, ref_mh, atol=5e-2, rtol=5e-2), "multi-head mismatch"

    print("KERNEL_OK")
</pallas_src>

<mosaic_0001>
module attributes {stable_mosaic.version = 11 : i64} {
  func.func @_head_kernel(%arg0: i32, %arg1: memref<2x8x264xf32, #tpu.memory_space<vmem>>, %arg2: memref<264x96xf32, #tpu.memory_space<vmem>>, %arg3: memref<2x8x32xf32, #tpu.memory_space<vmem>>) attributes {dimension_semantics = [#tpu.dimension_semantics<parallel>], iteration_bounds = array<i64: 2>, scalar_prefetch = 0 : i64, scratch_operands = 0 : i64, tpu.core_type = #tpu.core_type<tc>, window_params = [{transform_indices = @transform_0, window_bounds = array<i64: 2, 8, 264>}, {pipeline_mode = #tpu.pipeline_mode<synchronous>, transform_indices = @transform_1, window_bounds = array<i64: 264, 96>}, {transform_indices = @transform_2, window_bounds = array<i64: 2, 8, 32>}]} {
    %c0 = arith.constant 0 : index
    %c0_0 = arith.constant 0 : index
    %c0_1 = arith.constant 0 : index
    %0 = vector.load %arg1[%c0, %c0_0, %c0_1] : memref<2x8x264xf32, #tpu.memory_space<vmem>>, vector<2x8x264xf32>
    %1 = vector.shape_cast %0 : vector<2x8x264xf32> to vector<16x264xf32>
    %c0_2 = arith.constant 0 : index
    %c0_3 = arith.constant 0 : index
    %2 = vector.load %arg2[%c0_2, %c0_3] : memref<264x96xf32, #tpu.memory_space<vmem>>, vector<264x96xf32>
    %cst = arith.constant dense<0.000000e+00> : vector<16x96xf32>
    %3 = tpu.matmul %1, %2, %cst {dimension_numbers = #tpu.dot_dimension_numbers<[1], [0], [0], [1], [0, 0, 1, 1], [], []>} : vector<16x264xf32>, vector<264x96xf32>, vector<16x96xf32> -> vector<16x96xf32>
    %4 = vector.shape_cast %3 : vector<16x96xf32> to vector<2x8x96xf32>
    %5 = tpu.iota {dimensions = array<i32: 0>} : vector<8x8xi32>
    %6 = tpu.iota {dimensions = array<i32: 1>} : vector<8x8xi32>
    %7 = arith.cmpi sge, %5, %6 : vector<8x8xi32>
    %8 = vector.shape_cast %7 : vector<8x8xi1> to vector<1x8x8xi1>
    %9 = vector.extract_strided_slice %4 {offsets = [0, 0, 0], sizes = [2, 8, 32], strides = [1, 1, 1]} : vector<2x8x96xf32> to vector<2x8x32xf32>
    %10 = vector.extract_strided_slice %4 {offsets = [0, 0, 32], sizes = [2, 8, 32], strides = [1, 1, 1]} : vector<2x8x96xf32> to vector<2x8x32xf32>
    %11 = vector.extract_strided_slice %4 {offsets = [0, 0, 64], sizes = [2, 8, 32], strides = [1, 1, 1]} : vector<2x8x96xf32> to vector<2x8x32xf32>
    %cst_4 = arith.constant dense<0.000000e+00> : vector<2x8x8xf32>
    %12 = tpu.matmul %9, %10, %cst_4 {dimension_numbers = #tpu.dot_dimension_numbers<[2], [2], [1], [1], [0, 0, 0, 1, 1, 1], [0], [0]>} : vector<2x8x32xf32>, vector<2x8x32xf32>, vector<2x8x8xf32> -> vector<2x8x8xf32>
    %cst_5 = arith.constant 0xFF800000 : f32
    %13 = vector.shape_cast %8 : vector<1x8x8xi1> to vector<1x8x8xi1>
    %14 = vector.broadcast %13 : vector<1x8x8xi1> to vector<2x8x8xi1>
    %15 = vector.broadcast %cst_5 : f32 to vector<2x8x8xf32>
    %16 = arith.select %14, %12, %15 : vector<2x8x8xi1>, vector<2x8x8xf32>
    %cst_6 = arith.constant dense<0xFF800000> : vector<2x8xf32>
    %17 = vector.multi_reduction <maximumf>, %16, %cst_6 [2] : vector<2x8x8xf32> to vector<2x8xf32>
    %18 = vector.shape_cast %17 : vector<2x8xf32> to vector<2x8x1xf32>
    %19 = vector.broadcast %18 : vector<2x8x1xf32> to vector<2x8x8xf32>
    %20 = arith.subf %16, %19 : vector<2x8x8xf32>
    %21 = math.exp %20 : vector<2x8x8xf32>
    %cst_7 = arith.constant dense<0.000000e+00> : vector<2x8xf32>
    %22 = vector.multi_reduction <add>, %21, %cst_7 [2] : vector<2x8x8xf32> to vector<2x8xf32>
    %23 = vector.shape_cast %22 : vector<2x8xf32> to vector<2x8x1xf32>
    %24 = vector.broadcast %23 : vector<2x8x1xf32> to vector<2x8x8xf32>
    %25 = arith.divf %21, %24 : vector<2x8x8xf32>
    %cst_8 = arith.constant dense<0.000000e+00> : vector<2x8x32xf32>
    %26 = tpu.matmul %25, %11, %cst_8 {dimension_numbers = #tpu.dot_dimension_numbers<[2], [1], [1], [2], [0, 0, 0, 1, 1, 2], [0], [0]>} : vector<2x8x8xf32>, vector<2x8x32xf32>, vector<2x8x32xf32> -> vector<2x8x32xf32>
    %c0_9 = arith.constant 0 : index
    %c0_10 = arith.constant 0 : index
    %c0_11 = arith.constant 0 : index
    %27 = vector.load %arg3[%c0_9, %c0_10, %c0_11] : memref<2x8x32xf32, #tpu.memory_space<vmem>>, vector<2x8x32xf32>
    tpu.vector_store %arg3[%c0_9, %c0_10, %c0_11], %26 {strides = array<i32>} : memref<2x8x32xf32, #tpu.memory_space<vmem>>, vector<2x8x32xf32>,
    return
  }
  func.func @transform_0(%arg0: i32) -> (i32, i32, i32) {
    %c0_i32 = arith.constant 0 : i32
    %c0_i32_0 = arith.constant 0 : i32
    %c0_i32_1 = arith.constant 0 : i32
    return %arg0, %c0_i32, %c0_i32_0 : i32, i32, i32
  }
  func.func @transform_1(%arg0: i32) -> (i32, i32) {
    %c0_i32 = arith.constant 0 : i32
    %c0_i32_0 = arith.constant 0 : i32
    %c0_i32_1 = arith.constant 0 : i32
    return %c0_i32, %c0_i32_0 : i32, i32
  }
  func.func @transform_2(%arg0: i32) -> (i32, i32, i32) {
    %c0_i32 = arith.constant 0 : i32
    %c0_i32_0 = arith.constant 0 : i32
    %c0_i32_1 = arith.constant 0 : i32
    return %arg0, %c0_i32, %c0_i32_0 : i32, i32, i32
  }
}

</mosaic_0001>

<bundles_post_ra>
// kernel: head_forward.1
= control target key start
LH: loop header
LB: loop body
LE: loop exit
PB: predicated region body
PF: predicated region fallthrough
CT: control target
= control target key end

     0   :  { %7 = vsyncpa [#allocation3], 0  ;;  %s1415_s0 = inlined_call_operand.hbm [shape: f32[4,8,264], index: 0, kind: input, shape index: {}]   ;;  %s1416_s1 = inlined_call_operand.hbm [shape: f32[264,96], index: 1, kind: input, shape index: {}]   ;;  %s1417_s2 = inlined_call_operand.hbm [shape: f32[4,8,32], index: 2, kind: output, shape index: {}]  }
   0x1   :  { %9 = vsyncpa [#allocation3 + $0x1], 0 }
   0x2   :  { %10 = vsyncpa [#allocation6], 0 }
   0x3   :  { %11 = vsyncpa [#allocation4], 0 }
   0x4   :  { %13 = vsyncpa [#allocation4 + $0x1], 0  ;;  %s1179_s9 = smov 0   ;;  %s1181_s10 = smov 0  }
   0x5   :  { %s1183_s11 = smov 0   ;;  %s1185_s12 = smov 0  }
   0x6 LB: > { %s1200_s13 = sadd.s32 4294967295, %s1149_s12   ;;  %s813_s14 = sadd.s32 4294967294, %s1149_s12   ;;  %s1149_s12 = sphi %s1185_s12, %s1437_s12   ;;  %s1145_s11 = sphi %s1183_s11, %s1436_s11   ;;  %s1141_s10 = sphi %s1181_s10, %s1435_s10   ;;  %s1137_s9 = sphi %s1179_s9, %s1434_s9  }
   0x7   : > { %p39_p0 = scmp.ne.s32.totalorder %s1141_s10, %s1137_s9  ;;  %p1418_p1 = scmp.eq.s32.totalorder %s1200_s13, 0 }
   0x8   : > { %p90_p3 = scmp.eq.s32.totalorder %s813_s14, 1  ;;  %p814_p5 = scmp.ge.s32.totalorder %s1149_s12, 1 }
   0x9   : > { %p1209_p4 = por %p1418_p1, %p39_p0  ;;  %p97_p7 = scmp.lt.s32.totalorder %s1149_s12, 3 }
   0xa   : > { %p1214_p6 = por %p90_p3, %p39_p0  ;;  %s1151_s18 = smov [#allocation5]  }
   0xb   : > { %s1421_s15 = scalar_select %p1209_p4, 1, 0 }
   0xc   : > { %s1422_s16 = scalar_select %p1214_p6, 1, 0 }
   0xd   : > { %p1219_p8 = pnand %p814_p5, %p97_p7  ;;  %s109_s19 = sshll.u32 %s1151_s18, 4  ;;  %s1223_s19 = int_to_ptr.vmem [resolvable:$true] %s109_s19 }
   0xe   : > { %s1235_s21 = sadd.s32 1, %s1149_s12   ;;  %s26_s22 = sadd.s32 1, %s1145_s11 }
   0xf   : > { %s1423_s17 = scalar_select %p1219_p8, 1, 0 }
  0x10   : > { %p954_p9 = pneg %p1219_p8  ;;  %s23_s23 = ssub.s32 %s1149_s12, %s1235_s21 }
  0x11   : > { %s1021_s26 = scalar_lea.hbm %s1416_s1, 4224 }
  0x12   : > { %p1230_p11 = pnand %p954_p9, %p1418_p1  ;;  %p1022_p12 = scmp.ne.s32.totalorder %s1416_s1, %s1021_s26 }
  0x13   : > { %p1028_p5 = scmp.lt.u32.totalorder %s1021_s26, %s1416_s1 }
  0x14   : > { %p1023_p13 = pneg %p1230_p11 }
  0x16   : > { %p1024_p0 = pnand %p1023_p13, %p1022_p12 }
  0x18   : > { %p1025_p3 = pneg %p1024_p0 }
  0x1a   : > { %p1030_p7 = pnand %p1028_p5, %p1025_p3 }
  0x1c   : > { %1033 = shalt.err (!%p1030_p7)
}
  0x1d   : > { %s1034_s3 = scalar_lea.vmem %s1223_s19, 4224  ;;  %p1042_p2 = scmp.lt.s32.totalorder %s1223_s19, %s1223_s19 }
  0x1e   : > { %p1035_p9 = scmp.ne.s32.totalorder %s1223_s19, %s1034_s3  ;;  %p1043_p6 = scmp.lt.s32.totalorder %s1034_s3, %s1034_s3 }
  0x20   : > { %p1037_p10 = pnand %p1035_p9, %p1023_p13  ;;  %p1044_p4 = por %p1043_p6, %p1042_p2 }
  0x22   : > { %p1038_p1 = pneg %p1037_p10 }
  0x24   : > { %p1045_p8 = pnand %p1044_p4, %p1038_p1 }
  0x26   : > { %1048 = shalt.err (!%p1045_p8)
}
  0x27   : > { %s1152_s4 = smov 128   ;;  %s1153_s5 = smov 8  }
  0x28   : > { %957 = dma.hbm_to_vmem [thread:$0]  (!%p1230_p11), %s1416_s1, 4224, %s1223_s19, [#allocation6], %s1152_s4, %s1152_s4, %s1153_s5  }
  0x29   : > { %p24_p2 = scmp.eq.s32.totalorder %s23_s23, 0  ;;  %p33_p1 = scmp.ne.s32.totalorder %s1145_s11, %s1141_s10 }
  0x2a   : > { %p34_p4 = scmp.eq.s32.totalorder %s1149_s12, 0  ;;  %p967_p6 = scmp.lt.s32.totalorder %s1149_s12, 2 }
  0x2b   : > { %s1266_s8 = scalar_select %p24_p2, %s1145_s11, %s26_s22  }
  0x2c   : > { %p35_p8 = por %p34_p4, %p33_p1  ;;  %p1425_p10 = scmp.eq.s32.totalorder %s1200_s13, 1 }
  0x2d   : > { %s123_s18 = sand.u32 1, %s1145_s11   ;;  %s944_s24 = smul.u32 768, %s1149_s12 }
  0x2e   : > { %p1270_p12 = por %p1425_p10, %p33_p1  ;;  %s943_s25 = smul.u32 48, %s123_s18 }
  0x2f   : > { %s1279_s27 = scalar_lea.hbm %s1415_s0, %s944_s24  ;;  %p1281_p11 = pnand %p967_p6, %p35_p8 }
  0x30   : > { %s127_s22 = scalar_lea.vmem [#allocation2], %s943_s25  ;;  %s1287_s28 = scalar_lea.sflag [#allocation3], %s123_s18 }
  0x31   : > { %s135_s23 = sshll.u32 %s127_s22, 4  ;;  %s1049_s29 = scalar_lea.hbm %s1279_s27, 768  ;;  %s1285_s23 = int_to_ptr.vmem [resolvable:$true] %s135_s23 }
  0x32   : > { %p1050_p13 = scmp.ne.s32.totalorder %s1279_s27, %s1049_s29  ;;  %p1051_p0 = pneg %p1281_p11 }
  0x33   : > { %s1054_s4 = scalar_lea.hbm %s1415_s0, 1536  ;;  %p1055_p7 = scmp.lt.u32.totalorder %s1279_s27, %s1415_s0 }
  0x34   : > { %p1052_p3 = pnand %p1051_p0, %p1050_p13  ;;  %p1056_p9 = scmp.lt.u32.totalorder %s1054_s4, %s1049_s29 }
  0x35   : > { %p1058_p1 = scmp.lt.u32.totalorder %s1049_s29, %s1279_s27 }
  0x36   : > { %p1053_p5 = pneg %p1052_p3  ;;  %p1057_p2 = por %p1056_p9, %p1055_p7 }
  0x38   : > { %p1059_p4 = por %p1058_p1, %p1057_p2 }
  0x3a   : > { %p1060_p6 = pnand %p1059_p4, %p1053_p5 }
  0x3c   : > { %1063 = shalt.err (!%p1060_p6)
}
  0x3d   : > { %s1064_s7 = scalar_lea.vmem %s1285_s23, 768  ;;  %s1154_s18 = smov [#allocation2]  }
  0x3e   : > { %p1065_p8 = scmp.ne.s32.totalorder %s1285_s23, %s1064_s7  ;;  %s1069_s24 = sshll.u32 %s1154_s18, 4  ;;  %s1070_s24 = int_to_ptr.vmem [resolvable:$false] %s1069_s24 }
  0x3f   : > { %s1071_s25 = scalar_lea.vmem %s1070_s24, 1536  ;;  %p1072_p3 = scmp.lt.s32.totalorder %s1285_s23, %s1070_s24 }
  0x40   : > { %p1067_p10 = pnand %p1065_p8, %p1051_p0  ;;  %p1073_p7 = scmp.lt.s32.totalorder %s1071_s25, %s1064_s7 }
  0x42   : > { %p1068_p13 = pneg %p1067_p10  ;;  %p1074_p9 = por %p1073_p7, %p1072_p3 }
  0x44   : > { %p1075_p2 = pnand %p1074_p9, %p1068_p13 }
  0x46   : > { %1078 = shalt.err (!%p1075_p2)
}
  0x47   : > { %s1155_s20 = smov 384   ;;  %s1156_s26 = smov 24  }
  0x48   : > { %961 = dma.hbm_to_vmem [thread:$0]  (!%p1281_p11), %s1279_s27, 768, %s1285_s23, %s1287_s28, %s1155_s20, %s1155_s20, %s1156_s26  }
  0x49   : > { %p1428_p0 = scmp.ne.s32.totalorder %s1423_s17, 0 }
  0x4a   : > { %s1318_s22 = sand.u32 (!%p1428_p0), 1, %s1141_s10   ;;  %p1429_p5 = scmp.ne.s32.totalorder (!%p1428_p0), %s1421_s15, 0 }
  0x4b   : > { %147 = sbr.rel (%p1428_p0) target bundleno = 1214 (0x4be), region = 28  ;;  %s150_s30 = scalar_lea.sflag (!%p1428_p0), [#allocation3], %s1318_s22 }
  0x4c   : > { %s945_s29 = smul.u32 (!%p1428_p0), 48, %s1318_s22 }
  0x4e   : > { %s1322_s3 = scalar_lea.vmem (!%p1428_p0), [#allocation2], %s945_s29 }
  0x52   : > { %1124 = dma.done.wait (%p1429_p5), %s150_s30, 768  }
  0x53   : > { %1126 = vsyncadd (%p1429_p5), %s150_s30, 4294966528  ;;  %p1430_p11 = scmp.eq.s32.totalorder %s1200_s13, 0 }
  0x55   : > { %1128 = dma.done.wait (%p1430_p11), [#allocation6], 4224   ;;  %p1431_p1 = pmov %p1430_p11 }
  0x56   : > { %v202_v0 = vld [vmem:[#allocation5 + $0x80] sm:$0xff]  ;;  %v203_v1 = vld [vmem:[#allocation5 + $0x88] sm:$0xff]  ;;  %v204_v5 = vld [vmem:[#allocation5 + $0x90] sm:$0xff]  ;;  %vm219_vm0 = vcmask 64512   ;;  %v1157_v55 = vmov 0.0   ;;  %vm1158_vm1 = vmmov 0  }
  0x57   : > { %1130 = vsyncadd (%p1431_p1), [#allocation6], 4294963072  ;;  %v186_v2 = vld [vmem:[#allocation5] sm:$0xff]  ;;  %v911_v3 = vpack.c.bf16 %v203_v1, %v202_v0  ;;  %v187_v4 = vld [vmem:[#allocation5 + $0x8] sm:$0xff]  ;;  %s1159_s15 = smov 96   ;;  %vm384_vm2 = vcmask 261120  }
  0x58   : > { %v205_v6 = vld [vmem:[#allocation5 + $0x98] sm:$0xff]  ;;  %v913_v7 = vpack.c.bf16 %v187_v4, %v186_v2  ;;  %v188_v9 = vld [vmem:[#allocation5 + $0x10] sm:$0xff]  ;;  %v206_v11 = vld [vmem:[#allocation5 + $0xa0] sm:$0xff]  ;;  %v376_v4 = vlaneseq  ;;  %s1160_s17 = smov 64   ;;  %s822_s27 = sshll.u32 %s1318_s22, 4 }
  0x59   : > { %v915_v8 = vpack.c.bf16 %v205_v6, %v204_v5  ;;  %v189_v10 = vld [vmem:[#allocation5 + $0x18] sm:$0xff]  ;;  %912 = vmatprep.subr.bf16.mxu0 %v911_v3  ;;  %v207_v12 = vld [vmem:[#allocation5 + $0xa8] sm:$0xff]  ;;  %v190_v15 = vld [vmem:[#allocation5 + $0x20] sm:$0xff]  ;;  %s177_s19 = scalar_lea.vmem [#allocation7], %s822_s27  ;;  %s836_s28 = sshll.u32 %s1200_s13, 8 }
  0x5a   : > { %914 = vmatpush3.bf16.msra.mxu0 %v913_v7  ;;  %v917_v13 = vpack.c.bf16 %v189_v10, %v188_v9  ;;  %v919_v14 = vpack.c.bf16 %v207_v12, %v206_v11  ;;  %v191_v16 = vld [vmem:[#allocation5 + $0x28] sm:$0xff]  ;;  %v208_v17 = vld [vmem:[#allocation5 + $0xb0] sm:$0xff]  ;;  %v209_v18 = vld [vmem:[#allocation5 + $0xb8] sm:$0xff]  ;;  %v377_v5 = vshrl.u32 %v376_v4, 7  ;;  %v379_v6 = vand.u32 127, %v376_v4  ;;  %s730_s23 = sshll.u32 %s177_s19, 4  ;;  %s1370_s6 = scalar_lea.hbm %s1417_s2, %s836_s28  ;;  %s1365_s23 = int_to_ptr.vmem [resolvable:$true] %s730_s23 }
  0x5b   : > { %916 = vmatprep.subr.bf16.mxu0 %v915_v8  ;;  %v921_v19 = vpack.c.bf16 %v191_v16, %v190_v15  ;;  %v923_v20 = vpack.c.bf16 %v209_v18, %v208_v17  ;;  %v192_v21 = vld [vmem:[#allocation5 + $0x30] sm:$0xff]  ;;  %v193_v22 = vld [vmem:[#allocation5 + $0x38] sm:$0xff]  ;;  %v210_v23 = vld [vmem:[#allocation5 + $0xc0] sm:$0xff]  ;;  %s717_s7 = scalar_lea.sflag [#allocation4], %s1318_s22  ;;  %s1079_s13 = scalar_lea.vmem %s1365_s23, 256 }
  0x5c   : > { %v211_v24 = vld [vmem:[#allocation5 + $0xc8] sm:$0xff]  ;;  %v218_v26 = vld [vmem:[#allocation5 + $0x100] sm:$0xff]  ;;  %v925_v28 = vpack.c.bf16 %v193_v22, %v192_v21  ;;  %v212_v33 = vld [vmem:[#allocation5 + $0xd0] sm:$0xff]  ;;  %vm380_vm3 = vcmp.ge.s32.totalorder %v377_v5, %v379_v6  ;;  %p1080_p4 = scmp.ne.s32.totalorder %s1365_s23, %s1079_s13  ;;  %s1161_s18 = smov [#allocation7]  }
  0x5d   : > { %v181_v25 = vld [vmem:[%s1322_s3 + $0x8] sm:$0xff]  ;;  %v182_v27 = vld [vmem:[%s1322_s3 + $0x10] sm:$0xff]  ;;  %886 = vmatprep.subr.mxu1 %v218_v26  ;;  %v927_v30 = vpack.c.bf16 %v211_v24, %v210_v23  ;;  %v180_v52 = vld [vmem:[%s1322_s3] sm:$0xff]  ;;  %s1083_s24 = sshll.u32 %s1161_s18, 4  ;;  %s1084_s24 = int_to_ptr.vmem [resolvable:$false] %s1083_s24 }
  0x5e   : > { %918 = vmatpush3.bf16.msra.mxu0 %v917_v13  ;;  %290 = vmatprep.mubr.f32.mxu0 %v181_v25  ;;  %v185_v29 = vld [vmem:[%s1322_s3 + $0x28] sm:$0xff]  ;;  %v194_v31 = vld [vmem:[#allocation5 + $0x40] sm:$0xff]  ;;  %v196_v37 = vld [vmem:[#allocation5 + $0x50] sm:$0xff]  ;;  %p1081_p6 = pnand %p1080_p4, %p1270_p12  ;;  %s1085_s25 = scalar_lea.vmem %s1084_s24, 512 }
  0x5f   : > { %920 = vmatprep.subr.bf16.mxu0 %v919_v14  ;;  %v195_v32 = vld [vmem:[#allocation5 + $0x48] sm:$0xff]  ;;  %887 = vmatpush3.msra.mxu1 %v218_v26  ;;  %v213_v34 = vld [vmem:[#allocation5 + $0xd8] sm:$0xff]  ;;  %v214_v39 = vld [vmem:[#allocation5 + $0xe0] sm:$0xff]  ;;  %p1086_p10 = scmp.lt.s32.totalorder %s1365_s23, %s1084_s24  ;;  %p1087_p13 = scmp.lt.s32.totalorder %s1085_s25, %s1079_s13 }
  0x60   : > { %888 = vmatprep.mubr.msk.f32.mxu1 %vm219_vm0, %v182_v27  ;;  %v929_v35 = vpack.c.bf16 %v195_v32, %v194_v31  ;;  %v931_v36 = vpack.c.bf16 %v213_v34, %v212_v33  ;;  %v197_v38 = vld [vmem:[#allocation5 + $0x58] sm:$0xff]  ;;  %v215_v40 = vld [vmem:[#allocation5 + $0xe8] sm:$0xff]  ;;  %v198_v43 = vld [vmem:[#allocation5 + $0x60] sm:$0xff]  ;;  %891 = vmatprep.subr.mxu1 %v1157_v55  ;;  %p1082_p8 = pneg %p1081_p6 }
  0x61   : > { %889 = vmatmul.mubr.msk.f32.vlgmr.msra.gmra.mrb[0].mxu1 %vm219_vm0, %v185_v29  ;;  %v933_v41 = vpack.c.bf16 %v197_v38, %v196_v37  ;;  %v935_v42 = vpack.c.bf16 %v215_v40, %v214_v39  ;;  %v199_v44 = vld [vmem:[#allocation5 + $0x68] sm:$0xff]  ;;  %v216_v45 = vld [vmem:[#allocation5 + $0xf0] sm:$0xff]  ;;  %v217_v46 = vld [vmem:[#allocation5 + $0xf8] sm:$0xff]  ;;  %p1088_p3 = por %p1087_p13, %p1086_p10 }
  0x62   : > { %922 = vmatpush3.bf16.msra.mxu0 %v921_v19  ;;  %v937_v47 = vpack.c.bf16 %v199_v44, %v198_v43  ;;  %v939_v48 = vpack.c.bf16 %v217_v46, %v216_v45  ;;  %v200_v49 = vld [vmem:[#allocation5 + $0x70] sm:$0xff]  ;;  %v201_v50 = vld [vmem:[#allocation5 + $0x78] sm:$0xff]  ;;  %893 = vmatprep.mubr.msk.f32.mxu1 %vm1158_vm1, %v1157_v55 }
  0x63   : > { %924 = vmatprep.subr.bf16.mxu0 %v923_v20  ;;  %v941_v51 = vpack.c.bf16 %v201_v50, %v200_v49  ;;  %v184_v53 = vld [vmem:[%s1322_s3 + $0x20] sm:$0xff]  ;;  %v183_v54 = vld [vmem:[%s1322_s3 + $0x18] sm:$0xff]  ;;  %p1089_p7 = pnand %p1088_p3, %p1082_p8 }
  0x66   : > { %926 = vmatpush3.bf16.msra.mxu0 %v925_v28 }
  0x67   : > { %928 = vmatprep.subr.bf16.mxu0 %v927_v30 }
  0x6a   : > { %930 = vmatpush3.bf16.msra.mxu0 %v929_v35 }
  0x6b   : > { %932 = vmatprep.subr.bf16.mxu0 %v931_v36 }
  0x6e   : > { %934 = vmatpush3.bf16.msra.mxu0 %v933_v41 }
  0x6f   : > { %936 = vmatprep.subr.bf16.mxu0 %v935_v42 }
  0x72   : > { %938 = vmatpush3.bf16.msra.mxu0 %v937_v47 }
  0x73   : > { %940 = vmatprep.subr.bf16.mxu0 %v939_v48 }
  0x76   : > { %942 = vmatpush3.bf16.msra.mxu0 %v941_v51 }
  0x79   : > { %291 = vmatmul.mubr.f32.vlgmr.msra.gmra.mrb[0].mxu0 %v180_v52 }
  0x7a   : > { %295 = vmatprep.mubr.f32.mxu0 %v184_v53 }
  0x7d   : > { %296 = vmatmul.mubr.f32.gmra.mrb[2].mxu0 %v183_v54 }
 0x134   : > { %v890_v56 = vpop.f32.mrb[0].mxu1 }
 0x135   : > { %v367_v57 = vpop.f32.mrb[1].mxu1 }
 0x14c   : > { %v869_v58 = vpop.f32.mrb[0].mxu0 }
 0x14d   : > { %v870_v59 = vpop.f32.mrb[1].mxu0 }
 0x14e   : > { %v871_v60 = vadd.f32 %v870_v59, %v869_v58 }
 0x150   : > { %v368_v61 = vadd.f32 %v871_v60, %v367_v57  ;;  %v872_v62 = vpop.f32.mrb[2].mxu0 }
 0x151   : > { %v873_v63 = vpop.f32.mrb[3].mxu0 }
 0x152   : > { %v874_v0 = vadd.f32 %v873_v63, %v872_v62  ;;  %382 = vrot.lane.b32.xlu0 %v368_v61, %s1159_s15 }
 0x154   : > { %v373_v1 = vadd.f32 %v890_v56, %v874_v0 }
 0x156   : > { %460 = vrot.lane.b32.xlu0 %v373_v1, %s1159_s15 }
 0x1c4   : > { %v383_v2 = vpop.permute.xlu0 %382 }
 0x1c5   : > { %892 = vmatpush3.xpose.msk.msra.mxu1 %vm384_vm2, %v383_v2 }
 0x1c6   : > { %896 = vmatprep.subr.mxu1 %v1157_v55 }
 0x1c8   : > { %894 = vmatmul.mubr.msk.f32.vlgmr.msra.gmra.mrb[2].mxu1 %vm384_vm2, %v368_v61  ;;  %v461_v3 = vpop.permute.xlu0 %460 }
 0x1c9   : > { %897 = vmatpush3.xpose.msk.msra.mxu1 %vm384_vm2, %v461_v3  ;;  %898 = vmatprep.mubr.msk.f32.mxu1 %vm1158_vm1, %v1157_v55 }
 0x1ca   : > { %901 = vmatprep.subr.mxu1 %v1157_v55 }
 0x1cc   : > { %899 = vmatmul.mubr.msk.f32.vlgmr.msra.gmra.mrb[4].mxu1 %vm384_vm2, %v373_v1 }
 0x1cd   : > { %903 = vmatprep.mubr.msk.f32.mxu1 %vm1158_vm1, %v1157_v55 }
 0x29b   : > { %v455_v7 = vpop.f32.mrb[2].mxu1 }
 0x29c   : > { %v538_v8 = vsel %vm380_vm3, %v455_v7, -inf  ;;  %v895_v9 = vpop.f32.mrb[3].mxu1 }
 0x29d   : > { %v540_v10 = vsel %vm219_vm0, %v538_v8, -inf }
 0x29e   : > { %541 = vmax.xlane.f32.xlu1 %v540_v10 }
 0x29f   : > { %v532_v11 = vpop.f32.mrb[4].mxu1 }
 0x2a0   : > { %v539_v12 = vsel %vm380_vm3, %v532_v11, -inf  ;;  %v900_v13 = vpop.f32.mrb[5].mxu1 }
 0x2a1   : > { %v543_v14 = vsel %vm219_vm0, %v539_v12, -inf }
 0x2a2   : > { %544 = vmax.xlane.f32.xlu1 %v543_v14 }
 0x2b3   : > { %562 = vrot.lane.b32.xlu1 %v368_v61, %s1160_s17 }
 0x32b   : > { %v542_v15 = vpop.xlane.xlu1 %541 }
 0x32c   : > { %v546_v16 = vsub.f32 %v538_v8, %v542_v15 }
 0x32e   : > { %v548_v17 = vmul.f32 1.442695, %v546_v16 }
 0x32f   : > { %v545_v18 = vpop.xlane.xlu1 %544 }
 0x330   : > { %1013 = vpow2.f32 %v548_v17  ;;  %v547_v19 = vsub.f32 %v539_v12, %v545_v18 }
 0x332   : > { %v550_v20 = vmul.f32 1.442695, %v547_v19 }
 0x333   : > { %v563_v21 = vpop.permute.xlu1 %562 }
 0x334   : > { %1015 = vpow2.f32 %v550_v20  ;;  %902 = vmatpush3.msra.mxu1 %v563_v21 }
 0x335   : > { %906 = vmatprep.subr.mxu1 %v1157_v55 }
 0x33a   : > { %v1014_v22 = vpop.eup %1013 }
 0x33b   : > { %v552_v23 = vsel %vm219_vm0, %v1014_v22, 0.0 }
 0x33c   : > { %553 = vadd.xlane.f32.xlu0 %v552_v23 }
 0x33e   : > { %v1016_v24 = vpop.eup %1015 }
 0x33f   : > { %v555_v25 = vsel %vm219_vm0, %v1016_v24, 0.0 }
 0x340   : > { %556 = vadd.xlane.f32.xlu1 %v555_v25 }
 0x351   : > { %638 = vrot.lane.b32.xlu1 %v373_v1, %s1160_s17 }
 0x3c9   : > { %v554_v26 = vpop.xlane.xlu0 %553 }
 0x3ca   : > { %1017 = vrcp.f32 %v554_v26 }
 0x3cd   : > { %v557_v27 = vpop.xlane.xlu1 %556 }
 0x3ce   : > { %1019 = vrcp.f32 %v557_v27 }
 0x3d1   : > { %v639_v30 = vpop.permute.xlu1 %638 }
 0x3d4   : > { %v1018_v28 = vpop.eup %1017 }
 0x3d5   : > { %v559_v29 = vmul.f32 %v1018_v28, %v1014_v22 }
 0x3d7   : > { %904 = vmatmul.mubr.msk.f32.vlgmr.msra.gmra.mrb[6].mxu1 %vm219_vm0, %v559_v29 }
 0x3d8   : > { %v1020_v31 = vpop.eup %1019  ;;  %907 = vmatpush3.msra.mxu1 %v639_v30  ;;  %908 = vmatprep.mubr.msk.f32.mxu1 %vm1158_vm1, %v1157_v55 }
 0x3d9   : > { %v561_v32 = vmul.f32 %v1020_v31, %v1016_v24 }
 0x3db   : > { %909 = vmatmul.mubr.msk.f32.vlgmr.msra.gmra.mrb[8].mxu1 %vm219_vm0, %v561_v32 }
 0x4aa   : > { %v634_v33 = vpop.f32.mrb[6].mxu1 }
 0x4ab   : > { %714 = vst.msk [vmem:[%s177_s19] sm:$0xff] %vm384_vm2, %v634_v33  ;;  %v905_v34 = vpop.f32.mrb[7].mxu1 }
 0x4ae   : > { %v710_v35 = vpop.f32.mrb[8].mxu1 }
 0x4af   : > { %715 = vst.msk [vmem:[%s177_s19 + $0x8] sm:$0xff] %vm384_vm2, %v710_v35  ;;  %v910_v36 = vpop.f32.mrb[9].mxu1 }
 0x4b0   : > { %1092 = shalt.err (!%p1089_p7)
}
 0x4b1   : > { %s1093_s20 = scalar_lea.hbm %s1370_s6, 256  ;;  %s1097_s30 = scalar_lea.hbm %s1417_s2, 512 }
 0x4b2   : > { %p1094_p9 = scmp.ne.s32.totalorder %s1370_s6, %s1093_s20  ;;  %p1098_p5 = scmp.lt.u32.totalorder %s1370_s6, %s1417_s2 }
 0x4b3   : > { %p1099_p11 = scmp.lt.u32.totalorder %s1097_s30, %s1093_s20  ;;  %p1101_p4 = scmp.lt.u32.totalorder %s1093_s20, %s1370_s6 }
 0x4b4   : > { %p1095_p2 = pnand %p1094_p9, %p1270_p12 }
 0x4b5   : > { %p1100_p1 = por %p1099_p11, %p1098_p5 }
 0x4b6   : > { %p1096_p0 = pneg %p1095_p2 }
 0x4b7   : > { %p1102_p6 = por %p1101_p4, %p1100_p1 }
 0x4b9   : > { %p1103_p8 = pnand %p1102_p6, %p1096_p0 }
 0x4bb   : > { %1106 = shalt.err (!%p1103_p8)
}
 0x4bc   : > { %s1162_s17 = smov 128   ;;  %s1163_s27 = smov 8  }
 0x4bd   : > { %952 = dma.vmem_to_hbm [thread:$0]  (%p1270_p12), %s1365_s23, 256, %s1370_s6, %s717_s7, %s1162_s17, %s1162_s17, %s1163_s27  }
 0x4be PF: > { %s745_s19 = sand.u32 1, %s1137_s9   ;;  %p1432_p10 = scmp.ne.s32.totalorder %s1422_s16, 0 }
 0x4bf   : > { %p1433_p13 = scmp.ge.s32.totalorder %s1149_s12, 2  ;;  %s746_s28 = scalar_lea.sflag [#allocation4], %s745_s19 }
 0x4c1   : > { %p963_p3 = pnand %p1433_p13, %p1432_p10 }
 0x4c3   : > { %1132 = dma.done.wait (!%p963_p3), %s746_s28, 256  }
 0x4c4   : > { %1134 = vsyncadd (!%p963_p3), %s746_s28, 4294967040  ;;  %p16_p7 = scmp.ge.s32.totalorder %s1235_s21, 4   ;;  %s1434_s9 = smov %s1141_s10 }
 0x4c5   : > { %s1435_s10 = smov %s1145_s11  ;;  %s1436_s11 = smov %s1266_s8 }
 0x4c6   : > { %s1437_s12 = smov %s1235_s21  ;;  %18 = sbr.rel (!%p16_p7) target bundleno = 6 (0x6), region = 77 }
 0x4cd   :  { %751 = vsyncpa [#allocation3], 1 }
 0x4ce   :  { %753 = vsyncpa [#allocation3 + $0x1], 1 }
 0x4cf   :  { %754 = vsyncpa [#allocation6], 1 }
 0x4d0   :  { %755 = vsyncpa [#allocation4], 1 }
 0x4d1   :  { %757 = vsyncpa [#allocation4 + $0x1], 1 }

</bundles_post_ra>
